<compile_context>
chip_gen: v5e
topology: v5e:2x2
jax: 0.10.0
libtpu: 0.0.40
codegen_flags: <defaults>
</compile_context>

<pallas_src>
import functools

import jax
import jax.numpy as jnp
from jax.experimental import pallas as pl
from jax.experimental.pallas import tpu as pltpu


def ann_kernel(x_ref, w1_ref, b1_ref, w2_ref, b2_ref, w3_ref, b3_ref, o_ref):
    # fc1 + relu: in-kernel f32->bf16 cast of x (free on VPU), f32 MXU accumulate.
    x = x_ref[...].astype(w1_ref.dtype)
    h1 = jnp.dot(x, w1_ref[...], preferred_element_type=jnp.float32)
    h1 = jnp.maximum(h1 + b1_ref[...], 0.0)
    # fc2 + tanh (tanh lands on the EUP slot, effectively free next to MXU work).
    h2 = jnp.dot(h1.astype(w2_ref.dtype), w2_ref[...],
                 preferred_element_type=jnp.float32)
    h2 = jnp.tanh(h2 + b2_ref[...])
    # fc3 (lane-padded to 64 output columns), no activation.
    out = jnp.dot(h2.astype(w3_ref.dtype), w3_ref[...],
                  preferred_element_type=jnp.float32)
    o_ref[...] = (out + b3_ref[...]).astype(o_ref.dtype)


def _round_up(v, m):
    return ((v + m - 1) // m) * m


@functools.partial(jax.jit, static_argnames=("tm",))
def ann_forward(x, params, *, tm=None):
    """x: (B, input_size) f32.  params: dict of w1,b1,w2,b2,w3,b3 (weights as (in, out))."""
    matmul_dtype = jnp.bfloat16
    B, in_size = x.shape
    H = params["w1"].shape[1]
    out_size = params["w3"].shape[1]

    # Row-tile selection (trace-time Python ints):
    #  - single grid step for small/medium batches (per-step overhead dominates there)
    #  - at least 2 grid steps for large batches so both v7x TensorCores get work.
    if tm is None:
        if B <= 1024:
            tm = _round_up(B, 8)
        else:
            tm = min(2048, _round_up(pl.cdiv(B, 2), 8))
    grid = (pl.cdiv(B, tm),)

    # Lane-pad fc3 output features only to a multiple of 64: the block's last dim
    # equals the full (padded) array last dim, so it's legal, and it halves the
    # padded f32 output HBM stream relative to padding to 128.
    out_pad = _round_up(out_size, 64)
    w3 = jnp.pad(params["w3"], ((0, 0), (0, out_pad - out_size)))
    b3 = jnp.pad(params["b3"], ((0, 0), (0, out_pad - out_size)))

    # bf16 matmul weights; biases stay f32 so elementwise math stays on the f32 VPU path.
    w1 = params["w1"].astype(matmul_dtype)
    w2 = params["w2"].astype(matmul_dtype)
    w3 = w3.astype(matmul_dtype)
    b1 = params["b1"].astype(jnp.float32)
    b2 = params["b2"].astype(jnp.float32)
    b3 = b3.astype(jnp.float32)

    const = lambda i: (0, 0)  # weights/biases resident across grid steps

    flops = 2 * B * (in_size * H + H * H + H * out_pad)
    bytes_accessed = (
        B * in_size * 4 + B * out_pad * 4             # f32 activations in / out
        + (w1.size + w2.size + w3.size) * 2           # bf16 weights
        + (b1.size + b2.size + b3.size) * 4           # f32 biases
    )
    cost = pl.CostEstimate(flops=flops, transcendentals=B * H,
                           bytes_accessed=bytes_accessed)

    out = pl.pallas_call(
        ann_kernel,
        out_shape=jax.ShapeDtypeStruct((B, out_pad), jnp.float32),
        grid=grid,
        in_specs=[
            pl.BlockSpec((tm, in_size), lambda i: (i, 0)),   # x tile (f32, cast in-kernel)
            pl.BlockSpec((in_size, H), const),               # w1
            pl.BlockSpec((1, H), const),                     # b1
            pl.BlockSpec((H, H), const),                     # w2
            pl.BlockSpec((1, H), const),                     # b2
            pl.BlockSpec((H, out_pad), const),               # w3 (padded to 64)
            pl.BlockSpec((1, out_pad), const),               # b3 (padded to 64)
        ],
        out_specs=pl.BlockSpec((tm, out_pad), lambda i: (i, 0)),
        compiler_params=pltpu.CompilerParams(dimension_semantics=("parallel",)),
        cost_estimate=cost,
    )(x, w1, b1, w2, b2, w3, b3)

    # Trim the 50->64 lane padding only (rows already exact; with out_pad=64 this
    # copy is half the cost it was at out_pad=128).
    return out[:, :out_size]


def init_params(key, input_size, hidden_size=128, output_size=50):
    """Deterministic synthetic init (shapes match the PyTorch module)."""
    ks = jax.random.split(key, 6)

    def lin(kw, kb, fan_in, fan_out):
        bound = 1.0 / jnp.sqrt(fan_in)  # torch.nn.Linear default-ish
        w = jax.random.uniform(kw, (fan_in, fan_out), jnp.float32, -bound, bound)
        b = jax.random.uniform(kb, (1, fan_out), jnp.float32, -bound, bound)
        return w, b

    w1, b1 = lin(ks[0], ks[1], input_size, hidden_size)
    w2, b2 = lin(ks[2], ks[3], hidden_size, hidden_size)
    w3, b3 = lin(ks[4], ks[5], hidden_size, output_size)
    return {"w1": w1, "b1": b1, "w2": w2, "b2": b2, "w3": w3, "b3": b3}


def ann_reference_bf16(x, p):
    """Reference with the same bf16-matmul / f32-accumulate semantics as the kernel."""
    c = lambda a: a.astype(jnp.bfloat16)
    h1 = jnp.maximum(
        jnp.dot(c(x), c(p["w1"]), preferred_element_type=jnp.float32) + p["b1"], 0.0)
    h2 = jnp.tanh(
        jnp.dot(c(h1), c(p["w2"]), preferred_element_type=jnp.float32) + p["b2"])
    return jnp.dot(c(h2), c(p["w3"]), preferred_element_type=jnp.float32) + p["b3"]


def ann_reference_f32(x, p):
    """Pure f32 reference of the PyTorch forward."""
    h1 = jnp.maximum(x @ p["w1"] + p["b1"], 0.0)
    h2 = jnp.tanh(h1 @ p["w2"] + p["b2"])
    return h2 @ p["w3"] + p["b3"]


if __name__ == "__main__":
    key = jax.random.PRNGKey(0)
    k_x, k_x2, k_p = jax.random.split(key, 3)

    input_size = 32      # stand-in for X_train_std.shape[1]
    hidden_size = 128
    output_size = 50
    params = init_params(k_p, input_size, hidden_size, output_size)

    # Small batch: single grid step, tm = round_up(8, 8) = 8.
    x = jax.random.normal(k_x, (8, input_size), jnp.float32)
    out = jax.block_until_ready(ann_forward(x, params))
    assert out.shape == (8, output_size)
    ref = ann_reference_bf16(x, params)
    assert jnp.allclose(out, ref, atol=2e-3, rtol=2e-3)
    ref32 = ann_reference_f32(x, params)
    assert jnp.allclose(out, ref32, atol=5e-2, rtol=5e-2)

    # Medium batch, default tiling (single step, tm = round_up(300, 8) = 304,
    # ragged final rows handled by Pallas without any wrapper-side pad).
    x2 = jax.random.normal(k_x2, (300, input_size), jnp.float32)
    out2 = jax.block_until_ready(ann_forward(x2, params))
    assert out2.shape == (300, output_size)
    ref2 = ann_reference_bf16(x2, params)
    assert jnp.allclose(out2, ref2, atol=2e-3, rtol=2e-3)

    # Same batch with an explicit small tile to exercise a multi-step grid
    # (grid = 3) plus a ragged last block.
    out3 = jax.block_until_ready(ann_forward(x2, params, tm=128))
    assert out3.shape == (300, output_size)
    assert jnp.allclose(out3, ref2, atol=2e-3, rtol=2e-3)

    print("KERNEL_OK")
</pallas_src>

<mosaic_0001>
module attributes {stable_mosaic.version = 11 : i64} {
  func.func @ann_kernel(%arg0: i32, %arg1: memref<8x32xf32, #tpu.memory_space<vmem>>, %arg2: memref<32x128xbf16, #tpu.memory_space<vmem>>, %arg3: memref<1x128xf32, #tpu.memory_space<vmem>>, %arg4: memref<128x128xbf16, #tpu.memory_space<vmem>>, %arg5: memref<1x128xf32, #tpu.memory_space<vmem>>, %arg6: memref<128x64xbf16, #tpu.memory_space<vmem>>, %arg7: memref<1x64xf32, #tpu.memory_space<vmem>>, %arg8: memref<8x64xf32, #tpu.memory_space<vmem>>) attributes {dimension_semantics = [#tpu.dimension_semantics<parallel>], iteration_bounds = array<i64: 1>, scalar_prefetch = 0 : i64, scratch_operands = 0 : i64, tpu.core_type = #tpu.core_type<tc>, window_params = [{transform_indices = @transform_0, window_bounds = array<i64: 8, 32>}, {pipeline_mode = #tpu.pipeline_mode<synchronous>, transform_indices = @transform_1, window_bounds = array<i64: 32, 128>}, {pipeline_mode = #tpu.pipeline_mode<synchronous>, transform_indices = @transform_2, window_bounds = array<i64: 1, 128>}, {pipeline_mode = #tpu.pipeline_mode<synchronous>, transform_indices = @transform_3, window_bounds = array<i64: 128, 128>}, {pipeline_mode = #tpu.pipeline_mode<synchronous>, transform_indices = @transform_4, window_bounds = array<i64: 1, 128>}, {pipeline_mode = #tpu.pipeline_mode<synchronous>, transform_indices = @transform_5, window_bounds = array<i64: 128, 64>}, {pipeline_mode = #tpu.pipeline_mode<synchronous>, transform_indices = @transform_6, window_bounds = array<i64: 1, 64>}, {transform_indices = @transform_7, window_bounds = array<i64: 8, 64>}]} {
    %c0 = arith.constant 0 : index
    %c0_0 = arith.constant 0 : index
    %0 = vector.load %arg1[%c0, %c0_0] : memref<8x32xf32, #tpu.memory_space<vmem>>, vector<8x32xf32>
    %1 = arith.truncf %0 : vector<8x32xf32> to vector<8x32xbf16>
    %c0_1 = arith.constant 0 : index
    %c0_2 = arith.constant 0 : index
    %2 = vector.load %arg2[%c0_1, %c0_2] : memref<32x128xbf16, #tpu.memory_space<vmem>>, vector<32x128xbf16>
    %cst = arith.constant dense<0.000000e+00> : vector<8x128xf32>
    %3 = tpu.matmul %1, %2, %cst {dimension_numbers = #tpu.dot_dimension_numbers<[1], [0], [0], [1], [0, 0, 1, 1], [], []>} : vector<8x32xbf16>, vector<32x128xbf16>, vector<8x128xf32> -> vector<8x128xf32>
    %c0_3 = arith.constant 0 : index
    %c0_4 = arith.constant 0 : index
    %4 = vector.load %arg3[%c0_3, %c0_4] : memref<1x128xf32, #tpu.memory_space<vmem>>, vector<1x128xf32>
    %5 = vector.broadcast %4 : vector<1x128xf32> to vector<8x128xf32>
    %6 = arith.addf %3, %5 : vector<8x128xf32>
    %cst_5 = arith.constant 0.000000e+00 : f32
    %7 = vector.broadcast %cst_5 : f32 to vector<8x128xf32>
    %8 = arith.maximumf %6, %7 : vector<8x128xf32>
    %9 = arith.truncf %8 : vector<8x128xf32> to vector<8x128xbf16>
    %c0_6 = arith.constant 0 : index
    %c0_7 = arith.constant 0 : index
    %10 = vector.load %arg4[%c0_6, %c0_7] : memref<128x128xbf16, #tpu.memory_space<vmem>>, vector<128x128xbf16>
    %cst_8 = arith.constant dense<0.000000e+00> : vector<8x128xf32>
    %11 = tpu.matmul %9, %10, %cst_8 {dimension_numbers = #tpu.dot_dimension_numbers<[1], [0], [0], [1], [0, 0, 1, 1], [], []>} : vector<8x128xbf16>, vector<128x128xbf16>, vector<8x128xf32> -> vector<8x128xf32>
    %c0_9 = arith.constant 0 : index
    %c0_10 = arith.constant 0 : index
    %12 = vector.load %arg5[%c0_9, %c0_10] : memref<1x128xf32, #tpu.memory_space<vmem>>, vector<1x128xf32>
    %13 = vector.broadcast %12 : vector<1x128xf32> to vector<8x128xf32>
    %14 = arith.addf %11, %13 : vector<8x128xf32>
    %15 = math.tanh %14 : vector<8x128xf32>
    %16 = arith.truncf %15 : vector<8x128xf32> to vector<8x128xbf16>
    %c0_11 = arith.constant 0 : index
    %c0_12 = arith.constant 0 : index
    %17 = vector.load %arg6[%c0_11, %c0_12] : memref<128x64xbf16, #tpu.memory_space<vmem>>, vector<128x64xbf16>
    %cst_13 = arith.constant dense<0.000000e+00> : vector<8x64xf32>
    %18 = tpu.matmul %16, %17, %cst_13 {dimension_numbers = #tpu.dot_dimension_numbers<[1], [0], [0], [1], [0, 0, 1, 1], [], []>} : vector<8x128xbf16>, vector<128x64xbf16>, vector<8x64xf32> -> vector<8x64xf32>
    %c0_14 = arith.constant 0 : index
    %c0_15 = arith.constant 0 : index
    %19 = vector.load %arg7[%c0_14, %c0_15] : memref<1x64xf32, #tpu.memory_space<vmem>>, vector<1x64xf32>
    %20 = vector.broadcast %19 : vector<1x64xf32> to vector<8x64xf32>
    %21 = arith.addf %18, %20 : vector<8x64xf32>
    %c0_16 = arith.constant 0 : index
    %c0_17 = arith.constant 0 : index
    %22 = vector.load %arg8[%c0_16, %c0_17] : memref<8x64xf32, #tpu.memory_space<vmem>>, vector<8x64xf32>
    tpu.vector_store %arg8[%c0_16, %c0_17], %21 {strides = array<i32>} : memref<8x64xf32, #tpu.memory_space<vmem>>, vector<8x64xf32>,
    return
  }
  func.func @transform_0(%arg0: i32) -> (i32, i32) {
    %c0_i32 = arith.constant 0 : i32
    %c0_i32_0 = arith.constant 0 : i32
    return %arg0, %c0_i32 : i32, i32
  }
  func.func @transform_1(%arg0: i32) -> (i32, i32) {
    %c0_i32 = arith.constant 0 : i32
    %c0_i32_0 = arith.constant 0 : i32
    %c0_i32_1 = arith.constant 0 : i32
    return %c0_i32, %c0_i32_0 : i32, i32
  }
  func.func @transform_2(%arg0: i32) -> (i32, i32) {
    %c0_i32 = arith.constant 0 : i32
    %c0_i32_0 = arith.constant 0 : i32
    %c0_i32_1 = arith.constant 0 : i32
    return %c0_i32, %c0_i32_0 : i32, i32
  }
  func.func @transform_3(%arg0: i32) -> (i32, i32) {
    %c0_i32 = arith.constant 0 : i32
    %c0_i32_0 = arith.constant 0 : i32
    %c0_i32_1 = arith.constant 0 : i32
    return %c0_i32, %c0_i32_0 : i32, i32
  }
  func.func @transform_4(%arg0: i32) -> (i32, i32) {
    %c0_i32 = arith.constant 0 : i32
    %c0_i32_0 = arith.constant 0 : i32
    %c0_i32_1 = arith.constant 0 : i32
    return %c0_i32, %c0_i32_0 : i32, i32
  }
  func.func @transform_5(%arg0: i32) -> (i32, i32) {
    %c0_i32 = arith.constant 0 : i32
    %c0_i32_0 = arith.constant 0 : i32
    %c0_i32_1 = arith.constant 0 : i32
    return %c0_i32, %c0_i32_0 : i32, i32
  }
  func.func @transform_6(%arg0: i32) -> (i32, i32) {
    %c0_i32 = arith.constant 0 : i32
    %c0_i32_0 = arith.constant 0 : i32
    %c0_i32_1 = arith.constant 0 : i32
    return %c0_i32, %c0_i32_0 : i32, i32
  }
  func.func @transform_7(%arg0: i32) -> (i32, i32) {
    %c0_i32 = arith.constant 0 : i32
    %c0_i32_0 = arith.constant 0 : i32
    return %arg0, %c0_i32 : i32, i32
  }
}

</mosaic_0001>

<bundles_post_ra>
// kernel: ann_forward.1
= control target key start
LH: loop header
LB: loop body
LE: loop exit
PB: predicated region body
PF: predicated region fallthrough
CT: control target
= control target key end

     0   :  { %s484_s0 = inlined_call_operand.vmem [shape: f32[8,32], index: 0, kind: input, shape index: {}]   ;;  %s485_s1 = inlined_call_operand.vmem [shape: bf16[32,128], index: 1, kind: input, shape index: {}]   ;;  %s486_s2 = inlined_call_operand.vmem [shape: f32[1,128], index: 2, kind: input, shape index: {}]   ;;  %s487_s3 = inlined_call_operand.vmem [shape: bf16[128,128], index: 3, kind: input, shape index: {}]   ;;  %s488_s4 = inlined_call_operand.vmem [shape: f32[1,128], index: 4, kind: input, shape index: {}]   ;;  %s489_s5 = inlined_call_operand.vmem [shape: bf16[128,64], index: 5, kind: input, shape index: {}]   ;;  %s490_s6 = inlined_call_operand.vmem [shape: f32[1,64], index: 6, kind: input, shape index: {}]   ;;  %s491_s7 = inlined_call_operand.hbm [shape: f32[8,64], index: 7, kind: output, shape index: {}]  }
   0x1   :  { %v325_v0 = vld [vmem:[%s485_s1 + $0x8] sm:$0xff]  ;;  %v333_v1 = vld [vmem:[%s487_s3 + $0x38] sm:$0xff]  ;;  %v324_v2 = vld [vmem:[%s485_s1] sm:$0xff] }
   0x2   :  { %60 = vmatpush.bf16.msra.mxu0 %v325_v0  ;;  %v28_v3 = vld [vmem:[%s484_s0] sm:$0xff]  ;;  %137 = vmatpush.bf16.msra.mxu1 %v333_v1  ;;  %v332_v4 = vld [vmem:[%s487_s3 + $0x30] sm:$0xff] }
   0x3   :  { %12 = vsyncpa [#allocation3], 0  ;;  %v29_v5 = vpack.c.bf16 %v28_v3, %v28_v3  ;;  %vm50_vm0 = vcmask 261120   ;;  %v331_v6 = vld [vmem:[%s487_s3 + $0x28] sm:$0xff]  ;;  %v330_v7 = vld [vmem:[%s487_s3 + $0x20] sm:$0xff]  ;;  %s374_s16 = smov [#allocation2]  }
   0x4   :  { %v329_v8 = vld [vmem:[%s487_s3 + $0x18] sm:$0xff]  ;;  %v328_v9 = vld [vmem:[%s487_s3 + $0x10] sm:$0xff]  ;;  %v327_v10 = vld [vmem:[%s487_s3 + $0x8] sm:$0xff]  ;;  %s240_s17 = sshll.u32 %s374_s16, 4  ;;  %s242_s19 = sshll.u32 %s491_s7, 4  ;;  %vm233_vm1 = vcmask 523264   ;;  %s241_s17 = int_to_ptr.vmem [resolvable:$true] %s240_s17  ;;  %s243_s19 = int_to_ptr.hbm [resolvable:$true] %s242_s19 }
   0x5   :  { %v326_v11 = vld [vmem:[%s487_s3] sm:$0xff]  ;;  %v341_v12 = vld [vmem:[%s489_s5 + $0x38] sm:$0xff]  ;;  %v340_v13 = vld [vmem:[%s489_s5 + $0x30] sm:$0xff] }
   0x6   :  { %61 = vmatpush.bf16.msra.mxu0 %v324_v2  ;;  %138 = vmatpush.bf16.msra.mxu1 %v332_v4  ;;  %v339_v14 = vld [vmem:[%s489_s5 + $0x28] sm:$0xff]  ;;  %v338_v15 = vld [vmem:[%s489_s5 + $0x20] sm:$0xff]  ;;  %v337_v16 = vld [vmem:[%s489_s5 + $0x18] sm:$0xff] }
   0x7   :  { %220 = vmatpush.bf16.msra.mxu2 %v341_v12  ;;  %v343_v17 = vld [vmem:[%s486_s2] ss:$0 sm:$0xff]  ;;  %v336_v23 = vld [vmem:[%s489_s5 + $0x10] sm:$0xff]  ;;  %v335_v24 = vld [vmem:[%s489_s5 + $0x8] sm:$0xff] }
   0x8   :  { %v334_v25 = vld [vmem:[%s489_s5] sm:$0xff] }
   0x9   :  { %259 = vmatmul.msk.bf16.vlgmr.msra.gmra.mxu0 %vm50_vm0, %v29_v5  ;;  %v344_v26 = vld [vmem:[%s488_s4] ss:$0 sm:$0xff] }
   0xa   :  { %139 = vmatpush.bf16.msra.mxu1 %v331_v6  ;;  %v345_v32 = vld [vmem:[%s490_s6] ss:$0 sm:$0xff] }
   0xb   :  { %221 = vmatpush.bf16.msra.mxu2 %v340_v13 }
   0xe   :  { %140 = vmatpush.bf16.msra.mxu1 %v330_v7 }
   0xf   :  { %222 = vmatpush.bf16.msra.mxu2 %v339_v14 }
  0x12   :  { %141 = vmatpush.bf16.msra.mxu1 %v329_v8 }
  0x13   :  { %223 = vmatpush.bf16.msra.mxu2 %v338_v15 }
  0x16   :  { %142 = vmatpush.bf16.msra.mxu1 %v328_v9 }
  0x17   :  { %224 = vmatpush.bf16.msra.mxu2 %v337_v16 }
  0x1a   :  { %143 = vmatpush.bf16.msra.mxu1 %v327_v10 }
  0x1b   :  { %225 = vmatpush.bf16.msra.mxu2 %v336_v23 }
  0x1e   :  { %144 = vmatpush.bf16.msra.mxu1 %v326_v11 }
  0x1f   :  { %226 = vmatpush.bf16.msra.mxu2 %v335_v24 }
  0x23   :  { %227 = vmatpush.bf16.msra.mxu2 %v334_v25 }
  0x86   :  { %v63_v18 = vpop.f32.mrf.mxu0 }
  0x87   :  { %v64_v19 = vadd.f32 %v343_v17, %v63_v18 }
  0x89   :  { %v67_v20 = vmax.f32 %v64_v19, 0.0 }
  0x8b   :  { %v68_v21 = vpack.c.bf16 %v67_v20, %v67_v20 }
  0x8d   :  { %145 = vmatmul.bf16.vlgmr.msra.gmra.mxu1 %v68_v21 }
  0x8e   :  { %v65_v22 = vpop.f32.mrf.mxu0 }
 0x10a   :  { %v146_v27 = vpop.f32.mrf.mxu1 }
 0x10b   :  { %v147_v28 = vadd.f32 %v344_v26, %v146_v27 }
 0x10d   :  { %346 = vtanh.f32 %v147_v28 }
 0x112   :  { %v148_v29 = vpop.f32.mrf.mxu1 }
 0x113   :  { %v347_v30 = vpop.eup %346 }
 0x114   :  { %v151_v31 = vpack.c.bf16 %v347_v30, %v347_v30 }
 0x116   :  { %228 = vmatmul.bf16.vlgmr.msra.gmra.mxu2 %v151_v31 }
 0x199   :  { %v229_v33 = vpop.f32.mrf.mxu2 }
 0x19a   :  { %v230_v34 = vadd.f32 %v345_v32, %v229_v33 }
 0x19c   :  { %234 = vst.msk [vmem:[#allocation2] sm:$0xff] %vm233_vm1, %v230_v34 }
 0x19d   :  { %245 = dma.vmem_to_hbm [thread:$0]  %s241_s17, 128, %s243_s19, [#allocation3]  }
 0x1a1   :  { %v231_v35 = vpop.f32.mrf.mxu2 }
 0x1a2   :  { %372 = dma.done.wait [#allocation3], 128  }
 0x1a3   :  { %373 = vsyncadd [#allocation3], 4294967168 }
 0x1a4   :  { %250 = vsyncpa [#allocation3], 1 }

</bundles_post_ra>
